<compile_context>
chip_gen: v7x
topology: tpu7x:2x2x1
jax: 0.10.0
libtpu: 0.0.40
codegen_flags: <defaults>
</compile_context>

<pallas_src>
import jax
import jax.numpy as jnp
from jax.experimental import pallas as pl
from jax.experimental.pallas import tpu as pltpu


def _round_up(n, m):
    return ((n + m - 1) // m) * m


def discriminator_kernel(x_ref, w1_ref, b1_ref, w2_ref, b2_ref, w3_ref, b3_ref,
                         o_ref):
    """Fused 3-layer MLP critic for one batch tile.

    x_ref:  (TB, D)  f32     -- streamed per grid step
    w1_ref: (D, H)   bf16    -- resident
    b1_ref: (1, H)   f32     -- resident
    w2_ref: (H, H)   bf16    -- resident
    b2_ref: (1, H)   f32     -- resident
    w3_ref: (1, H)   f32     -- resident (layer-3 weight as a row)
    b3_ref: (1, 1)   f32     -- SMEM scalar
    o_ref:  (1, TB)  f32     -- lane-dense output tile
    """
    x = x_ref[...].astype(jnp.bfloat16)

    # Layer 1: MXU matmul (bf16 in, f32 acc), bias + LeakyReLU(0.2) in f32.
    h1 = jnp.dot(x, w1_ref[...], preferred_element_type=jnp.float32)
    h1 = h1 + b1_ref[...]
    h1 = jnp.maximum(h1, 0.2 * h1)
    # Dropout(0.5): identity in eval mode.

    # Layer 2.
    h2 = jnp.dot(h1.astype(jnp.bfloat16), w2_ref[...],
                 preferred_element_type=jnp.float32)
    h2 = h2 + b2_ref[...]
    h2 = jnp.maximum(h2, 0.2 * h2)

    # Layer 3 (out_features == 1): VPU multiply + lane reduction instead of an
    # N=1 MXU matmul; result written lane-dense as (1, TB).
    logits = jnp.sum(h2 * w3_ref[...], axis=-1) + b3_ref[0, 0]   # (TB,)
    o_ref[...] = logits[None, :].astype(o_ref.dtype)


def discriminator_forward(x, params, *, block_b=512):
    """Eval-mode forward of the CTGAN critic via one fused Pallas kernel."""
    w1, b1, w2, b2, w3, b3 = params
    B, D = x.shape
    H = w1.shape[1]

    # Batch tile: multiple of 8 (sublane); when multiple tiles are needed the
    # tile is a multiple of 128 (lane-dense output blocks).  Default 512 rows
    # feeds the 256-row MXU well and keeps VMEM use small on v7x (64 MiB).
    block_b = _round_up(block_b, 128)
    TB = min(block_b, _round_up(B, 8))
    B_pad = _round_up(B, TB)
    if B_pad != B:
        x = jnp.pad(x, ((0, B_pad - B), (0, 0)))
    grid = (B_pad // TB,)

    # Cast MXU operand weights to bf16 once; they stay resident in VMEM across
    # the whole grid (constant index_map -> no re-DMA per step).
    w1b = w1.astype(jnp.bfloat16)
    w2b = w2.astype(jnp.bfloat16)
    b1r = b1.reshape(1, H).astype(jnp.float32)
    b2r = b2.reshape(1, H).astype(jnp.float32)
    w3r = w3.reshape(1, H).astype(jnp.float32)
    b3s = b3.reshape(1, 1).astype(jnp.float32)

    resident = lambda i: (0, 0)

    flops = 2 * B_pad * (D * H + H * H + H)
    bytes_accessed = (B_pad * D * 4            # x
                      + (D * H + H * H) * 2    # bf16 weights
                      + (3 * H + 1) * 4        # b1, b2, w3 row, b3
                      + B_pad * 4)             # output
    vmem_limit = int(min(
        48 << 20,
        max(4 << 20,
            2 * TB * D * 4          # double-buffered x tile
            + 2 * TB * 4            # double-buffered output tile
            + (D * H + H * H) * 2   # resident bf16 weights
            + 4 * H * 4             # b1, b2, w3 row
            + 4 * TB * H * 4        # h1/h2 intermediates + headroom
            + (1 << 20))))

    out = pl.pallas_call(
        discriminator_kernel,
        out_shape=jax.ShapeDtypeStruct((1, B_pad), jnp.float32),
        grid=grid,
        in_specs=[
            pl.BlockSpec((TB, D), lambda i: (i, 0)),            # x: streamed
            pl.BlockSpec((D, H), resident),                      # W1 (bf16)
            pl.BlockSpec((1, H), resident),                      # b1
            pl.BlockSpec((H, H), resident),                      # W2 (bf16)
            pl.BlockSpec((1, H), resident),                      # b2
            pl.BlockSpec((1, H), resident),                      # w3 row
            pl.BlockSpec(memory_space=pltpu.MemorySpace.SMEM),   # b3 scalar
        ],
        out_specs=pl.BlockSpec((1, TB), lambda i: (0, i)),       # lane-dense
        compiler_params=pltpu.CompilerParams(
            dimension_semantics=("parallel",),
            vmem_limit_bytes=vmem_limit),
        cost_estimate=pl.CostEstimate(
            flops=flops, transcendentals=0, bytes_accessed=bytes_accessed),
    )(x, w1b, b1r, w2b, b2r, w3r, b3s)

    return out[0, :B].reshape(B, 1)


def init_discriminator_params(key, i_input_dim, hidden=256):
    """Deterministic synthetic init (Kaiming-uniform-ish like torch.nn.Linear)."""
    ks = jax.random.split(key, 6)

    def linear(kw, kb, fan_in, fan_out):
        bound = 1.0 / jnp.sqrt(jnp.float32(fan_in))
        w = jax.random.uniform(kw, (fan_in, fan_out), jnp.float32, -bound, bound)
        b = jax.random.uniform(kb, (1, fan_out), jnp.float32, -bound, bound)
        return w, b

    w1, b1 = linear(ks[0], ks[1], i_input_dim, hidden)
    w2, b2 = linear(ks[2], ks[3], hidden, hidden)
    w3, b3 = linear(ks[4], ks[5], hidden, 1)
    return (w1, b1, w2, b2, w3, b3)


def discriminator_reference(x, params):
    """Plain-JAX reference mirroring the kernel's bf16-matmul / f32-accumulate
    numerics (layer 3 in f32), for correctness checking."""
    w1, b1, w2, b2, w3, b3 = params
    h1 = jnp.dot(x.astype(jnp.bfloat16), w1.astype(jnp.bfloat16),
                 preferred_element_type=jnp.float32) + b1
    h1 = jnp.maximum(h1, 0.2 * h1)
    h2 = jnp.dot(h1.astype(jnp.bfloat16), w2.astype(jnp.bfloat16),
                 preferred_element_type=jnp.float32) + b2
    h2 = jnp.maximum(h2, 0.2 * h2)
    return jnp.dot(h2, w3) + b3


if __name__ == "__main__":
    key = jax.random.PRNGKey(0)
    k_x, k_p, k_x2 = jax.random.split(key, 3)

    i_input_dim = 32   # dim(r) + dim(c), small synthetic value
    hidden = 256       # standard CTGAN critic width
    params = init_discriminator_params(k_p, i_input_dim, hidden)

    # Small batch: single tile path.
    x_small = jax.random.normal(k_x, (8, i_input_dim), dtype=jnp.float32)
    out_small = jax.block_until_ready(discriminator_forward(x_small, params))
    ref_small = discriminator_reference(x_small, params)
    assert out_small.shape == (8, 1)
    assert jnp.allclose(out_small, ref_small, atol=5e-3, rtol=5e-3), (
        float(jnp.max(jnp.abs(out_small - ref_small))))

    # Larger, non-multiple batch: exercises grid > 1, padding, and slicing.
    x_big = jax.random.normal(k_x2, (1040, i_input_dim), dtype=jnp.float32)
    out_big = jax.block_until_ready(discriminator_forward(x_big, params))
    ref_big = discriminator_reference(x_big, params)
    assert out_big.shape == (1040, 1)
    assert jnp.allclose(out_big, ref_big, atol=5e-3, rtol=5e-3), (
        float(jnp.max(jnp.abs(out_big - ref_big))))

    print("KERNEL_OK")
</pallas_src>

<mosaic_0001>
module attributes {stable_mosaic.version = 11 : i64} {
  func.func @discriminator_kernel(%arg0: i32, %arg1: memref<8x32xf32, #tpu.memory_space<vmem>>, %arg2: memref<32x256xbf16, #tpu.memory_space<vmem>>, %arg3: memref<1x256xf32, #tpu.memory_space<vmem>>, %arg4: memref<256x256xbf16, #tpu.memory_space<vmem>>, %arg5: memref<1x256xf32, #tpu.memory_space<vmem>>, %arg6: memref<1x256xf32, #tpu.memory_space<vmem>>, %arg7: memref<1x1xf32, #tpu.memory_space<smem>>, %arg8: memref<1x8xf32, #tpu.memory_space<vmem>>) attributes {dimension_semantics = [#tpu.dimension_semantics<parallel>], iteration_bounds = array<i64: 1>, scalar_prefetch = 0 : i64, scratch_operands = 0 : i64, tpu.core_type = #tpu.core_type<tc>, window_params = [{transform_indices = @transform_0, window_bounds = array<i64: 8, 32>}, {pipeline_mode = #tpu.pipeline_mode<synchronous>, transform_indices = @transform_1, window_bounds = array<i64: 32, 256>}, {pipeline_mode = #tpu.pipeline_mode<synchronous>, transform_indices = @transform_2, window_bounds = array<i64: 1, 256>}, {pipeline_mode = #tpu.pipeline_mode<synchronous>, transform_indices = @transform_3, window_bounds = array<i64: 256, 256>}, {pipeline_mode = #tpu.pipeline_mode<synchronous>, transform_indices = @transform_4, window_bounds = array<i64: 1, 256>}, {pipeline_mode = #tpu.pipeline_mode<synchronous>, transform_indices = @transform_5, window_bounds = array<i64: 1, 256>}, {transform_indices = @transform_6, window_bounds = array<i64: 1, 1>}, {transform_indices = @transform_7, window_bounds = array<i64: 1, 8>}]} {
    %c0 = arith.constant 0 : index
    %c0_0 = arith.constant 0 : index
    %0 = vector.load %arg1[%c0, %c0_0] : memref<8x32xf32, #tpu.memory_space<vmem>>, vector<8x32xf32>
    %1 = arith.truncf %0 : vector<8x32xf32> to vector<8x32xbf16>
    %c0_1 = arith.constant 0 : index
    %c0_2 = arith.constant 0 : index
    %2 = vector.load %arg2[%c0_1, %c0_2] : memref<32x256xbf16, #tpu.memory_space<vmem>>, vector<32x256xbf16>
    %cst = arith.constant dense<0.000000e+00> : vector<8x256xf32>
    %3 = tpu.matmul %1, %2, %cst {dimension_numbers = #tpu.dot_dimension_numbers<[1], [0], [0], [1], [0, 0, 1, 1], [], []>} : vector<8x32xbf16>, vector<32x256xbf16>, vector<8x256xf32> -> vector<8x256xf32>
    %c0_3 = arith.constant 0 : index
    %c0_4 = arith.constant 0 : index
    %4 = vector.load %arg3[%c0_3, %c0_4] : memref<1x256xf32, #tpu.memory_space<vmem>>, vector<1x256xf32>
    %5 = vector.broadcast %4 : vector<1x256xf32> to vector<8x256xf32>
    %6 = arith.addf %3, %5 : vector<8x256xf32>
    %cst_5 = arith.constant 2.000000e-01 : f32
    %7 = vector.broadcast %cst_5 : f32 to vector<8x256xf32>
    %8 = arith.mulf %7, %6 : vector<8x256xf32>
    %9 = arith.maximumf %6, %8 : vector<8x256xf32>
    %10 = arith.truncf %9 : vector<8x256xf32> to vector<8x256xbf16>
    %c0_6 = arith.constant 0 : index
    %c0_7 = arith.constant 0 : index
    %11 = vector.load %arg4[%c0_6, %c0_7] : memref<256x256xbf16, #tpu.memory_space<vmem>>, vector<256x256xbf16>
    %cst_8 = arith.constant dense<0.000000e+00> : vector<8x256xf32>
    %12 = tpu.matmul %10, %11, %cst_8 {dimension_numbers = #tpu.dot_dimension_numbers<[1], [0], [0], [1], [0, 0, 1, 1], [], []>} : vector<8x256xbf16>, vector<256x256xbf16>, vector<8x256xf32> -> vector<8x256xf32>
    %c0_9 = arith.constant 0 : index
    %c0_10 = arith.constant 0 : index
    %13 = vector.load %arg5[%c0_9, %c0_10] : memref<1x256xf32, #tpu.memory_space<vmem>>, vector<1x256xf32>
    %14 = vector.broadcast %13 : vector<1x256xf32> to vector<8x256xf32>
    %15 = arith.addf %12, %14 : vector<8x256xf32>
    %cst_11 = arith.constant 2.000000e-01 : f32
    %16 = vector.broadcast %cst_11 : f32 to vector<8x256xf32>
    %17 = arith.mulf %16, %15 : vector<8x256xf32>
    %18 = arith.maximumf %15, %17 : vector<8x256xf32>
    %c0_12 = arith.constant 0 : index
    %c0_13 = arith.constant 0 : index
    %19 = vector.load %arg6[%c0_12, %c0_13] : memref<1x256xf32, #tpu.memory_space<vmem>>, vector<1x256xf32>
    %20 = vector.broadcast %19 : vector<1x256xf32> to vector<8x256xf32>
    %21 = arith.mulf %18, %20 : vector<8x256xf32>
    %cst_14 = arith.constant dense<0.000000e+00> : vector<8xf32>
    %22 = vector.multi_reduction <add>, %21, %cst_14 [1] : vector<8x256xf32> to vector<8xf32>
    %c0_15 = arith.constant 0 : index
    %c0_16 = arith.constant 0 : index
    %23 = memref.load %arg7[%c0_15, %c0_16] : memref<1x1xf32, #tpu.memory_space<smem>>
    %24 = vector.broadcast %23 : f32 to vector<8xf32>
    %25 = arith.addf %22, %24 : vector<8xf32>
    %26 = vector.shape_cast %25 : vector<8xf32> to vector<1x8xf32>
    %c0_17 = arith.constant 0 : index
    %c0_18 = arith.constant 0 : index
    %27 = vector.load %arg8[%c0_17, %c0_18] : memref<1x8xf32, #tpu.memory_space<vmem>>, vector<1x8xf32>
    tpu.vector_store %arg8[%c0_17, %c0_18], %26 {strides = array<i32>} : memref<1x8xf32, #tpu.memory_space<vmem>>, vector<1x8xf32>,
    return
  }
  func.func @transform_0(%arg0: i32) -> (i32, i32) {
    %c0_i32 = arith.constant 0 : i32
    %c0_i32_0 = arith.constant 0 : i32
    return %arg0, %c0_i32 : i32, i32
  }
  func.func @transform_1(%arg0: i32) -> (i32, i32) {
    %c0_i32 = arith.constant 0 : i32
    %c0_i32_0 = arith.constant 0 : i32
    %c0_i32_1 = arith.constant 0 : i32
    return %c0_i32, %c0_i32_0 : i32, i32
  }
  func.func @transform_2(%arg0: i32) -> (i32, i32) {
    %c0_i32 = arith.constant 0 : i32
    %c0_i32_0 = arith.constant 0 : i32
    %c0_i32_1 = arith.constant 0 : i32
    return %c0_i32, %c0_i32_0 : i32, i32
  }
  func.func @transform_3(%arg0: i32) -> (i32, i32) {
    %c0_i32 = arith.constant 0 : i32
    %c0_i32_0 = arith.constant 0 : i32
    %c0_i32_1 = arith.constant 0 : i32
    return %c0_i32, %c0_i32_0 : i32, i32
  }
  func.func @transform_4(%arg0: i32) -> (i32, i32) {
    %c0_i32 = arith.constant 0 : i32
    %c0_i32_0 = arith.constant 0 : i32
    %c0_i32_1 = arith.constant 0 : i32
    return %c0_i32, %c0_i32_0 : i32, i32
  }
  func.func @transform_5(%arg0: i32) -> (i32, i32) {
    %c0_i32 = arith.constant 0 : i32
    %c0_i32_0 = arith.constant 0 : i32
    %c0_i32_1 = arith.constant 0 : i32
    return %c0_i32, %c0_i32_0 : i32, i32
  }
  func.func @transform_6(%arg0: i32) -> (i32, i32) {
    %c0_i32 = arith.constant 0 : i32
    %c0_i32_0 = arith.constant 0 : i32
    %c0_i32_1 = arith.constant 0 : i32
    return %c0_i32, %c0_i32_0 : i32, i32
  }
  func.func @transform_7(%arg0: i32) -> (i32, i32) {
    %c0_i32 = arith.constant 0 : i32
    %c0_i32_0 = arith.constant 0 : i32
    return %c0_i32, %arg0 : i32, i32
  }
}

</mosaic_0001>

<bundles_post_ra>
// kernel: tpu_custom_call.1
= control target key start
LH: loop header
LB: loop body
LE: loop exit
PB: predicated region body
PF: predicated region fallthrough
CT: control target
= control target key end

     0   :  { %13 = vsyncpa [#allocation4], 0  ;;  %s757_s0 = inlined_call_operand.hbm [shape: f32[8,32], index: 0, kind: input, shape index: {}]   ;;  %s758_s1 = inlined_call_operand.hbm [shape: bf16[32,256], index: 1, kind: input, shape index: {}]   ;;  %s759_s2 = inlined_call_operand.vmem [shape: f32[1,256], index: 2, kind: input, shape index: {}]   ;;  %s760_s3 = inlined_call_operand.hbm [shape: bf16[256,256], index: 3, kind: input, shape index: {}]   ;;  %s761_s4 = inlined_call_operand.vmem [shape: f32[1,256], index: 4, kind: input, shape index: {}]   ;;  %s762_s5 = inlined_call_operand.vmem [shape: f32[1,256], index: 5, kind: input, shape index: {}]   ;;  %s763_s6 = inlined_call_operand.<no memory space> [shape: f32[1,1], index: 6, kind: input, shape index: {}]   ;;  %s764_s7 = inlined_call_operand.hbm [shape: f32[1,8], index: 7, kind: output, shape index: {}]  }
   0x1   :  { %14 = vsyncpa [#allocation7], 0 }
   0x2   :  { %15 = vsyncpa [#allocation5], 0  ;;  %s644_s24 = smov [#allocation6]   ;;  %s550_s28 = scalar_lea.hbm %s758_s1, 512 }
   0x3   :  { %s31_s25 = sshll.u32 %s644_s24, 4  ;;  %p551_p0 = scmp.ne.s32.totalorder %s758_s1, %s550_s28  ;;  %s32_s25 = int_to_ptr.vmem [resolvable:$true] %s31_s25 }
   0x4   :  { %p554_p1 = scmp.lt.u32.totalorder %s550_s28, %s758_s1 }
   0x6   :  { %p556_p2 = pnand %p554_p1, %p551_p0 }
   0x8   :  { %559 = shalt.err (!%p556_p2)
}
   0x9   :  { %s560_s10 = scalar_lea.vmem %s32_s25, 512  ;;  %p565_p4 = scmp.lt.s32.totalorder %s32_s25, %s32_s25 }
   0xa   :  { %p561_p3 = scmp.ne.s32.totalorder %s32_s25, %s560_s10  ;;  %p566_p5 = scmp.lt.s32.totalorder %s560_s10, %s560_s10 }
   0xc   :  { %p567_p6 = por %p566_p5, %p565_p4 }
   0xe   :  { %p568_p7 = pnand %p567_p6, %p561_p3 }
  0x10   :  { %571 = shalt.err (!%p568_p7)
}
  0x11   :  { %s645_s11 = smov 128   ;;  %s646_s12 = smov 8  }
  0x12   :  { %37 = dma.hbm_to_vmem [thread:$0]  %s758_s1, 512, %s32_s25, [#allocation7], %s645_s11, %s645_s11, %s646_s12  }
  0x13   :  { %s647_s15 = smov [#allocation3]   ;;  %s648_s17 = smov [#allocation8]  }
  0x14   :  { %s22_s16 = sshll.u32 %s647_s15, 4  ;;  %s45_s18 = sshll.u32 %s648_s17, 4  ;;  %s23_s16 = int_to_ptr.vmem [resolvable:$true] %s22_s16  ;;  %s46_s18 = int_to_ptr.vmem [resolvable:$true] %s45_s18 }
  0x15   :  { %s572_s21 = scalar_lea.hbm %s757_s0, 128 }
  0x16   :  { %p573_p8 = scmp.ne.s32.totalorder %s757_s0, %s572_s21  ;;  %p576_p9 = scmp.lt.u32.totalorder %s572_s21, %s757_s0 }
  0x18   :  { %p578_p10 = pnand %p576_p9, %p573_p8 }
  0x1a   :  { %581 = shalt.err (!%p578_p10)
}
  0x1b   :  { %s582_s1 = scalar_lea.vmem %s23_s16, 128  ;;  %p587_p12 = scmp.lt.s32.totalorder %s23_s16, %s23_s16 }
  0x1c   :  { %p583_p11 = scmp.ne.s32.totalorder %s23_s16, %s582_s1  ;;  %p588_p13 = scmp.lt.s32.totalorder %s582_s1, %s582_s1 }
  0x1e   :  { %p589_p0 = por %p588_p13, %p587_p12 }
  0x20   :  { %p590_p1 = pnand %p589_p0, %p583_p11 }
  0x22   :  { %593 = shalt.err (!%p590_p1)
}
  0x23   :  { %25 = dma.hbm_to_vmem [thread:$0]  %s757_s0, 128, %s23_s16, [#allocation4]  }
  0x24   :  { %s594_s30 = scalar_lea.hbm %s760_s3, 4096 }
  0x25   :  { %p595_p2 = scmp.ne.s32.totalorder %s760_s3, %s594_s30  ;;  %p598_p3 = scmp.lt.u32.totalorder %s594_s30, %s760_s3 }
  0x27   :  { %p600_p4 = pnand %p598_p3, %p595_p2 }
  0x29   :  { %603 = shalt.err (!%p600_p4)
}
  0x2a   :  { %s604_s14 = scalar_lea.vmem %s46_s18, 4096  ;;  %p609_p6 = scmp.lt.s32.totalorder %s46_s18, %s46_s18 }
  0x2b   :  { %p605_p5 = scmp.ne.s32.totalorder %s46_s18, %s604_s14  ;;  %p610_p7 = scmp.lt.s32.totalorder %s604_s14, %s604_s14 }
  0x2d   :  { %p611_p8 = por %p610_p7, %p609_p6 }
  0x2f   :  { %p612_p9 = pnand %p611_p8, %p605_p5 }
  0x31   :  { %615 = shalt.err (!%p612_p9)
}
  0x32   :  { %51 = dma.hbm_to_vmem [thread:$0]  %s760_s3, 4096, %s46_s18, [#allocation7], %s645_s11, %s645_s11, %s646_s12  }
  0x33   :  { %638 = dma.done.wait [#allocation4], 128  }
  0x34   :  { %639 = vsyncadd [#allocation4], 4294967168 }
  0x35   :  { %640 = dma.done.wait [#allocation7], 4608  }
  0x36   :  { %641 = vsyncadd [#allocation7], 4294962688  ;;  %v649_v0 = vmov 0   ;;  %v496_v1 = vld [vmem:[#allocation6 + $0x4] ss:$8 sps:$4 sm:$0xff]   ;;  %v68_v5 = vld [vmem:[#allocation3] sm:$0xff]  ;;  %v76_v39 = vlaneseq }
  0x37   :  { %142 = vmatprep.mubr.bf16.mxu0 %v649_v0  ;;  %v498_v2 = vld [vmem:[#allocation6] ss:$8 sps:$4 sm:$0xff]   ;;  %110 = vmatprep.subr.bf16.mxu0 %v496_v1  ;;  %v499_v3 = vld [vmem:[#allocation6 + $0x14] ss:$8 sps:$4 sm:$0xff]   ;;  %v501_v4 = vld [vmem:[#allocation6 + $0x10] ss:$8 sps:$4 sm:$0xff]   ;;  %v69_v9 = vpack.c.bf16 %v68_v5, %v68_v5 }
  0x38   :  { %111 = vmatpush1.bf16.msra.mxu0 %v498_v2  ;;  %v502_v6 = vld [vmem:[#allocation8 + $0x4] ss:$8 sps:$4 sm:$0xff]   ;;  %v504_v7 = vld [vmem:[#allocation8] ss:$8 sps:$4 sm:$0xff]   ;;  %v505_v8 = vld [vmem:[#allocation8 + $0x14] ss:$8 sps:$4 sm:$0xff]  }
  0x39   :  { %112 = vmatprep.subr.bf16.mxu0 %v499_v3  ;;  %361 = vmatprep.subr.bf16.mxu1 %v502_v6  ;;  %v507_v10 = vld [vmem:[#allocation8 + $0x10] ss:$8 sps:$4 sm:$0xff]   ;;  %vm106_vm0 = vcmask 261120   ;;  %v508_v11 = vld [vmem:[#allocation8 + $0x24] ss:$8 sps:$4 sm:$0xff]   ;;  %v77_v40 = vshrl.u32 %v76_v39, 7 }
  0x3a   :  { %362 = vmatpush1.bf16.msra.mxu1 %v504_v7  ;;  %v510_v12 = vld [vmem:[#allocation8 + $0x20] ss:$8 sps:$4 sm:$0xff]   ;;  %v511_v13 = vld [vmem:[#allocation8 + $0x34] ss:$8 sps:$4 sm:$0xff]   ;;  %v513_v14 = vld [vmem:[#allocation8 + $0x30] ss:$8 sps:$4 sm:$0xff]  }
  0x3b   :  { %363 = vmatprep.subr.bf16.mxu1 %v505_v8  ;;  %v514_v15 = vld [vmem:[#allocation8 + $0x44] ss:$8 sps:$4 sm:$0xff]   ;;  %v516_v16 = vld [vmem:[#allocation8 + $0x40] ss:$8 sps:$4 sm:$0xff]   ;;  %v517_v17 = vld [vmem:[#allocation8 + $0x54] ss:$8 sps:$4 sm:$0xff]  }
  0x3c   :  { %113 = vmatpush1.bf16.msra.mxu0 %v501_v4  ;;  %v519_v18 = vld [vmem:[#allocation8 + $0x50] ss:$8 sps:$4 sm:$0xff]   ;;  %v520_v19 = vld [vmem:[#allocation8 + $0x64] ss:$8 sps:$4 sm:$0xff]   ;;  %v522_v20 = vld [vmem:[#allocation8 + $0x60] ss:$8 sps:$4 sm:$0xff]  }
  0x3d   :  { %v523_v21 = vld [vmem:[#allocation8 + $0x74] ss:$8 sps:$4 sm:$0xff]   ;;  %v525_v22 = vld [vmem:[#allocation8 + $0x70] ss:$8 sps:$4 sm:$0xff]   ;;  %v526_v23 = vld [vmem:[#allocation8 + $0x84] ss:$8 sps:$4 sm:$0xff]  }
  0x3e   :  { %364 = vmatpush1.bf16.msra.mxu1 %v507_v10  ;;  %v528_v24 = vld [vmem:[#allocation8 + $0x80] ss:$8 sps:$4 sm:$0xff]   ;;  %v529_v25 = vld [vmem:[#allocation8 + $0x94] ss:$8 sps:$4 sm:$0xff]   ;;  %v531_v26 = vld [vmem:[#allocation8 + $0x90] ss:$8 sps:$4 sm:$0xff]  }
  0x3f   :  { %456 = vmatmul.mubr.msk.bf16.vlgmr.msra.gmra.mrb[0].mxu0 %vm106_vm0, %v69_v9  ;;  %365 = vmatprep.subr.bf16.mxu1 %v508_v11  ;;  %v532_v27 = vld [vmem:[#allocation8 + $0xa4] ss:$8 sps:$4 sm:$0xff]   ;;  %v534_v28 = vld [vmem:[#allocation8 + $0xa0] ss:$8 sps:$4 sm:$0xff]   ;;  %v535_v29 = vld [vmem:[#allocation8 + $0xb4] ss:$8 sps:$4 sm:$0xff]  }
  0x40   :  { %v537_v30 = vld [vmem:[#allocation8 + $0xb0] ss:$8 sps:$4 sm:$0xff]   ;;  %v538_v31 = vld [vmem:[#allocation8 + $0xc4] ss:$8 sps:$4 sm:$0xff]   ;;  %v540_v32 = vld [vmem:[#allocation8 + $0xc0] ss:$8 sps:$4 sm:$0xff]  }
  0x41   :  { %v541_v33 = vld [vmem:[#allocation8 + $0xd4] ss:$8 sps:$4 sm:$0xff]   ;;  %v543_v34 = vld [vmem:[#allocation8 + $0xd0] ss:$8 sps:$4 sm:$0xff]   ;;  %v544_v35 = vld [vmem:[#allocation8 + $0xe4] ss:$8 sps:$4 sm:$0xff]  }
  0x42   :  { %366 = vmatpush1.bf16.msra.mxu1 %v510_v12  ;;  %v546_v36 = vld [vmem:[#allocation8 + $0xe0] ss:$8 sps:$4 sm:$0xff]   ;;  %v547_v37 = vld [vmem:[#allocation8 + $0xf4] ss:$8 sps:$4 sm:$0xff]   ;;  %v549_v38 = vld [vmem:[#allocation8 + $0xf0] ss:$8 sps:$4 sm:$0xff]  }
  0x43   :  { %367 = vmatprep.subr.bf16.mxu1 %v511_v13  ;;  %v78_v41 = vsub.s32 0, %v77_v40  ;;  %v74_v42 = vld [vmem:[%s759_s2] sm:$0x3]  ;;  %v82_v43 = vsub.s32 1, %v77_v40  ;;  %v428_v13 = vand.u32 127, %v76_v39  ;;  %vm434_vm1 = vcmask 57344  }
  0x44   :  { %v189_v58 = vld [vmem:[%s761_s4] sm:$0x3] }
  0x45   :  { %v79_v44 = vrot.slane %v74_v42, %v78_v41  ;;  %v83_v45 = vrot.slane %v74_v42, %v82_v43  ;;  %v194_v59 = vrot.slane %v189_v58, %v78_v41  ;;  %v198_v60 = vrot.slane %v189_v58, %v82_v43  ;;  %v406_v62 = vld [vmem:[%s762_s5] sm:$0x3]  ;;  %s650_s5 = smov [#allocation9]  }
  0x46   :  { %368 = vmatpush1.bf16.msra.mxu1 %v513_v14  ;;  %v411_v5 = vrot.slane %v406_v62, %v78_v41  ;;  %v415_v7 = vrot.slane %v406_v62, %v82_v43  ;;  %v424_v14 = vstv %s763_s6  ;;  %s442_s19 = sshll.u32 %s650_s5, 4  ;;  %s443_s19 = int_to_ptr.vmem [resolvable:$true] %s442_s19 }
  0x47   :  { %369 = vmatprep.subr.bf16.mxu1 %v514_v15  ;;  %v431_v15 = vsub.s32 %v428_v13, %v77_v40  ;;  %s616_s20 = scalar_lea.vmem %s443_s19, 16  ;;  %s620_s21 = scalar_lea.vmem %s443_s19, 32 }
  0x48   :  { %p617_p10 = scmp.ne.s32.totalorder %s443_s19, %s616_s20  ;;  %p621_p11 = scmp.lt.s32.totalorder %s443_s19, %s443_s19 }
  0x49   :  { %p622_p12 = scmp.lt.s32.totalorder %s620_s21, %s616_s20 }
  0x4a   :  { %370 = vmatpush1.bf16.msra.mxu1 %v516_v16 }
  0x4b   :  { %371 = vmatprep.subr.bf16.mxu1 %v517_v17  ;;  %p623_p13 = por %p622_p12, %p621_p11 }
  0x4d   :  { %p624_p0 = pnand %p623_p13, %p617_p10 }
  0x4e   :  { %372 = vmatpush1.bf16.msra.mxu1 %v519_v18 }
  0x4f   :  { %373 = vmatprep.subr.bf16.mxu1 %v520_v19 }
  0x52   :  { %374 = vmatpush1.bf16.msra.mxu1 %v522_v20 }
  0x53   :  { %375 = vmatprep.subr.bf16.mxu1 %v523_v21 }
  0x56   :  { %376 = vmatpush1.bf16.msra.mxu1 %v525_v22 }
  0x57   :  { %377 = vmatprep.subr.bf16.mxu1 %v526_v23 }
  0x5a   :  { %378 = vmatpush1.bf16.msra.mxu1 %v528_v24 }
  0x5b   :  { %379 = vmatprep.subr.bf16.mxu1 %v529_v25 }
  0x5e   :  { %380 = vmatpush1.bf16.msra.mxu1 %v531_v26 }
  0x5f   :  { %381 = vmatprep.subr.bf16.mxu1 %v532_v27 }
  0x62   :  { %382 = vmatpush1.bf16.msra.mxu1 %v534_v28 }
  0x63   :  { %383 = vmatprep.subr.bf16.mxu1 %v535_v29 }
  0x66   :  { %384 = vmatpush1.bf16.msra.mxu1 %v537_v30 }
  0x67   :  { %385 = vmatprep.subr.bf16.mxu1 %v538_v31 }
  0x6a   :  { %386 = vmatpush1.bf16.msra.mxu1 %v540_v32 }
  0x6b   :  { %387 = vmatprep.subr.bf16.mxu1 %v541_v33 }
  0x6e   :  { %388 = vmatpush1.bf16.msra.mxu1 %v543_v34 }
  0x6f   :  { %389 = vmatprep.subr.bf16.mxu1 %v544_v35 }
  0x72   :  { %390 = vmatpush1.bf16.msra.mxu1 %v546_v36 }
  0x73   :  { %391 = vmatprep.subr.bf16.mxu1 %v547_v37 }
  0x76   :  { %392 = vmatpush1.bf16.msra.mxu1 %v549_v38 }
 0x112   :  { %v144_v46 = vpop.f32.mrb[0].mxu0 }
 0x113   :  { %v145_v47 = vadd.f32 %v144_v46, %v79_v44  ;;  %v146_v48 = vpop.f32.mrb[1].mxu0 }
 0x114   :  { %v147_v49 = vadd.f32 %v146_v48, %v83_v45  ;;  %v148_v50 = vpop.f32.mrb[2].mxu0 }
 0x115   :  { %v151_v51 = vmul.f32 0.2, %v145_v47  ;;  %v149_v52 = vpop.f32.mrb[3].mxu0 }
 0x116   :  { %v152_v53 = vmul.f32 0.2, %v147_v49 }
 0x117   :  { %v153_v54 = vmax.f32 %v145_v47, %v151_v51 }
 0x118   :  { %v154_v55 = vmax.f32 %v147_v49, %v152_v53 }
 0x119   :  { %v155_v57 = vpack.c.bf16 %v153_v54, %v153_v54 }
 0x11a   :  { %v156_v56 = vpack.c.bf16 %v154_v55, %v154_v55 }
 0x11c   :  { %393 = vmatprep.mubr.bf16.mxu1 %v156_v56 }
 0x11d   :  { %394 = vmatmul.mubr.bf16.vlgmr.msra.gmra.mrb[0].mxu1 %v155_v57 }
 0x1f0   :  { %v395_v61 = vpop.f32.mrb[0].mxu1 }
 0x1f1   :  { %v396_v63 = vadd.f32 %v395_v61, %v194_v59  ;;  %v397_v0 = vpop.f32.mrb[1].mxu1 }
 0x1f2   :  { %v398_v1 = vadd.f32 %v397_v0, %v198_v60  ;;  %v399_v2 = vpop.f32.mrb[2].mxu1 }
 0x1f3   :  { %v402_v3 = vmul.f32 0.2, %v396_v63  ;;  %v400_v4 = vpop.f32.mrb[3].mxu1 }
 0x1f4   :  { %v403_v6 = vmul.f32 0.2, %v398_v1 }
 0x1f5   :  { %v404_v8 = vmax.f32 %v396_v63, %v402_v3 }
 0x1f6   :  { %v405_v9 = vmax.f32 %v398_v1, %v403_v6 }
 0x1f7   :  { %v418_v10 = vmul.f32 %v411_v5, %v404_v8 }
 0x1f8   :  { %v419_v11 = vmul.f32 %v415_v7, %v405_v9 }
 0x1fa   :  { %v420_v12 = vadd.f32 %v419_v11, %v418_v10 }
 0x1fc   :  { %421 = vadd.xlane.f32.xlu0 %v420_v12 }
 0x289   :  { %v422_v16 = vpop.xlane.xlu0 %421 }
 0x28a   :  { %v425_v17 = vadd.f32 %v424_v14, %v422_v16 }
 0x28c   :  { %v432_v18 = vrot.slane %v425_v17, %v431_v15 }
 0x28e   :  { %435 = vst.msk [vmem:[#allocation9] sm:$0x1] %vm434_vm1, %v432_v18 }
 0x28f   :  { %627 = shalt.err (!%p624_p0)
}
 0x290   :  { %s628_s6 = scalar_lea.hbm %s764_s7, 16 }
 0x291   :  { %p629_p1 = scmp.ne.s32.totalorder %s764_s7, %s628_s6  ;;  %p632_p2 = scmp.lt.u32.totalorder %s628_s6, %s764_s7 }
 0x293   :  { %p634_p3 = pnand %p632_p2, %p629_p1 }
 0x295   :  { %637 = shalt.err (!%p634_p3)
}
 0x296   :  { %445 = dma.vmem_to_hbm [thread:$0]  %s443_s19, 16, %s764_s7, [#allocation5]  }
 0x297   :  { %642 = dma.done.wait [#allocation5], 16  }
 0x298   :  { %643 = vsyncadd [#allocation5], 4294967280 }
 0x299   :  { %449 = vsyncpa [#allocation4], 1 }
 0x29a   :  { %450 = vsyncpa [#allocation7], 1 }
 0x29b   :  { %451 = vsyncpa [#allocation5], 1 }

</bundles_post_ra>
